<compile_context>
chip_gen: v5e
topology: v5e:2x2
jax: 0.10.0
libtpu: 0.0.40
codegen_flags: <defaults>
</compile_context>

<pallas_src>
import numpy as np

import jax
import jax.numpy as jnp
from jax import lax
from jax.experimental import pallas as pl
from jax.experimental.pallas import tpu as pltpu

LANES = 128
SUBLANES = 8
MAX_ROW_TILE = 4096  # 4096 * 128 * 4B = 2 MiB per input tile (f32)


def _make_metrics_kernel(rows, row_tile, cpp, needs_mask):
    """Builds the per-tile kernel.

    Inputs:  p_ref, y_ref : (row_tile, LANES) tiles of predict / label.
    Outputs: tp_ref, pre_ref, real_ref : (SUBLANES, LANES) per-lane partial
             sums, resident across the inner ("arbitrary") grid axis.
    """

    def kernel(p_ref, y_ref, tp_ref, pre_ref, real_ref):
        j = pl.program_id(1)

        @pl.when(j == 0)
        def _():
            tp_ref[...] = jnp.zeros_like(tp_ref)
            pre_ref[...] = jnp.zeros_like(pre_ref)
            real_ref[...] = jnp.zeros_like(real_ref)

        # pre = sigmoid(x) > 0.5  <=>  x > 0.0  (strict; tie at 0.5 -> class 0)
        pre_b = p_ref[...] > 0.0
        real_b = y_ref[...] > 0.5

        if needs_mask:
            # Row-granular validity mask for the partial last tile and for
            # duplicated (clamped) tiles introduced by the parallel split.
            row0 = (pl.program_id(0) * cpp + j) * row_tile
            row_ids = row0 + lax.broadcasted_iota(
                jnp.int32, (row_tile, LANES), 0)
            valid = row_ids < rows
            pre_b = valid & pre_b
            real_b = valid & real_b

        pre = pre_b.astype(jnp.float32)
        real = real_b.astype(jnp.float32)
        tp = (pre_b & real_b).astype(jnp.float32)

        def fold(v):
            # (row_tile, 128) -> (row_tile//8, 8, 128) -> sum over leading dim:
            # pure VPU vreg adds, no XLU work in the steady-state loop.
            return jnp.sum(
                v.reshape(row_tile // SUBLANES, SUBLANES, LANES), axis=0)

        tp_ref[...] += fold(tp)
        pre_ref[...] += fold(pre)
        real_ref[...] += fold(real)

    return kernel


def _confusion_sums(predict, label):
    """Returns (TP, sum_pre, sum_real) as f32 scalars via the Pallas kernel."""
    p = predict.reshape(-1)
    y = label.reshape(-1)
    n = p.shape[0]

    chunk = SUBLANES * LANES  # 1024
    if n % chunk != 0:
        # TODO(synk): this pad copies both arrays; only taken when numel is
        # not a multiple of 1024 (rare for NCHW image tensors).
        pad = chunk - n % chunk
        p = jnp.pad(p, (0, pad), constant_values=0.0)  # 0 > 0 is False -> pre=0
        y = jnp.pad(y, (0, pad), constant_values=0.0)  # 0 > 0.5 is False -> real=0

    rows = p.shape[0] // LANES            # multiple of 8
    row_tile = min(MAX_ROW_TILE, rows)    # multiple of 8, <= array rows
    n_tiles = -(-rows // row_tile)        # ceil
    p_cores = 2 if n_tiles >= 2 else 1    # feed both TCs on v7x
    cpp = -(-n_tiles // p_cores)          # tiles per core (ceil)
    needs_mask = (rows % row_tile != 0) or (p_cores * cpp != n_tiles)

    p2 = p.reshape(rows, LANES)
    y2 = y.reshape(rows, LANES)

    def in_map(pi, j):
        # Clamp fully-out-of-range duplicate tiles back to the last real tile;
        # the in-kernel row mask zeroes their contribution.
        return (jnp.minimum(pi * cpp + j, n_tiles - 1), 0)

    out_block = pl.BlockSpec((None, SUBLANES, LANES), lambda pi, j: (pi, 0, 0))
    out_sds = jax.ShapeDtypeStruct((p_cores, SUBLANES, LANES), jnp.float32)

    kernel = _make_metrics_kernel(rows, row_tile, cpp, needs_mask)

    tp_p, pre_p, real_p = pl.pallas_call(
        kernel,
        out_shape=(out_sds, out_sds, out_sds),
        grid_spec=pltpu.PrefetchScalarGridSpec(
            num_scalar_prefetch=0,
            grid=(p_cores, cpp),
            in_specs=[
                pl.BlockSpec((row_tile, LANES), in_map),
                pl.BlockSpec((row_tile, LANES), in_map),
            ],
            out_specs=(out_block, out_block, out_block),
        ),
        compiler_params=pltpu.CompilerParams(
            dimension_semantics=("parallel", "arbitrary")),
    )(p2, y2)

    # Tiny final reductions (3 x P x 8 x 128 floats) fused into the same jit.
    return jnp.sum(tp_p), jnp.sum(pre_p), jnp.sum(real_p)


@jax.jit
def _forward_device(predict, label):
    """Everything device-side: sums + scalar ratio math, one packed result."""
    tp, sum_pre, sum_real = _confusion_sums(predict, label)
    fp = sum_pre - tp
    fn = sum_real - tp
    eps = 1e-08
    pod = tp / (tp + fn + eps)
    far = fp / (tp + fp + eps)
    csi = tp / (tp + fn + fp + eps)
    pod_neg = fn / (tp + fn + eps)
    return jnp.stack([tp, fp, fn, pod, far, csi, pod_neg])


class PodFarCSI:
    """JAX/Pallas port of the PyTorch PodFarCSI metric module."""

    def __init__(self):
        # Host-side running state (cheap scalar bookkeeping, as in the
        # original module which detaches to CPU anyway).
        self.matrix = np.zeros((2, 2), dtype=np.float64)
        self.POD = 0.0
        self.FAR = 0.0
        self.CSI = 0.0
        self.POD_NEG = 0.0
        self.pod_num = 0.0
        self.far_num = 0.0
        self.csi_num = 0.0
        self.pod_neg_num = 0.0

    def forward(self, predict, label):
        if predict.shape != label.shape:
            raise Exception(
                f"predict shape {predict.shape} is different from "
                f"label shape {label.shape}")

        # Single device->host transfer per call.
        res = np.asarray(_forward_device(predict, label))
        TP, FP, FN, POD, FAR, CSI, POD_NEG = (float(v) for v in res)

        self.matrix[1][1] += TP
        self.matrix[1][0] += FN
        self.matrix[0][1] += FP

        if POD > 0.001 and FAR > 0.001 and CSI > 0.001:
            self.POD_NEG += POD_NEG
            self.POD += POD
            self.FAR += FAR
            self.CSI += CSI
            self.pod_num += 1
            self.csi_num += 1
            self.far_num += 1
            self.pod_neg_num += 1
        return (POD, FAR, CSI, POD_NEG)

    def update(self):
        POD = self.POD / (self.pod_num + 1e-08)
        FAR = self.FAR / (self.far_num + 1e-08)
        CSI = self.CSI / (self.csi_num + 1e-08)
        POD_NEG = self.POD_NEG / (self.pod_neg_num + 1e-08)
        return (POD, FAR, CSI, POD_NEG)


def _reference_sums(predict, label):
    """Pure-JAX reference for correctness checks."""
    pre = (jax.nn.sigmoid(predict.astype(jnp.float32)) > 0.5).astype(jnp.float32)
    real = (label.astype(jnp.float32) > 0.5).astype(jnp.float32)
    return jnp.sum(pre * real), jnp.sum(pre), jnp.sum(real)


def _check(predict, label):
    res = _forward_device(predict, label)
    jax.block_until_ready(res)
    tp, fp, fn = (float(v) for v in np.asarray(res)[:3])
    rtp, rsp, rsr = (float(v) for v in _reference_sums(predict, label))
    assert abs(tp - rtp) < 1e-5, (tp, rtp)
    assert abs((tp + fp) - rsp) < 1e-5, (tp + fp, rsp)
    assert abs((tp + fn) - rsr) < 1e-5, (tp + fn, rsr)


if __name__ == "__main__":
    key = jax.random.PRNGKey(0)
    k1, k2, k3, k4 = jax.random.split(key, 4)

    # NCHW logit / label maps consistent with convective nowcasting.
    predict = jax.random.normal(k1, (2, 4, 16, 16), dtype=jnp.float32)
    label = (jax.random.uniform(k2, (2, 4, 16, 16)) > 0.7).astype(jnp.float32)

    metric = PodFarCSI()
    pod, far, csi, pod_neg = metric.forward(predict, label)

    # Validate kernel vs. pure-JAX reference on the main shape...
    _check(predict, label)
    # ...and on a shape whose numel is not a multiple of 1024 (pad/mask path).
    predict2 = jax.random.normal(k3, (2, 3, 10, 10), dtype=jnp.float32)
    label2 = (jax.random.uniform(k4, (2, 3, 10, 10)) > 0.5).astype(jnp.float32)
    _check(predict2, label2)

    print("KERNEL_OK")
</pallas_src>

<mosaic_0001>
module attributes {stable_mosaic.version = 11 : i64} {
  func.func @kernel(%arg0: i32, %arg1: i32, %arg2: memref<16x128xf32, #tpu.memory_space<vmem>>, %arg3: memref<16x128xf32, #tpu.memory_space<vmem>>, %arg4: memref<1x8x128xf32, #tpu.memory_space<vmem>>, %arg5: memref<1x8x128xf32, #tpu.memory_space<vmem>>, %arg6: memref<1x8x128xf32, #tpu.memory_space<vmem>>) attributes {dimension_semantics = [#tpu.dimension_semantics<parallel>, #tpu.dimension_semantics<arbitrary>], iteration_bounds = array<i64: 1, 1>, scalar_prefetch = 0 : i64, scratch_operands = 0 : i64, tpu.core_type = #tpu.core_type<tc>, window_params = [{transform_indices = @transform_0, window_bounds = array<i64: 16, 128>}, {transform_indices = @transform_1, window_bounds = array<i64: 16, 128>}, {transform_indices = @transform_2, window_bounds = array<i64: 1, 8, 128>}, {transform_indices = @transform_3, window_bounds = array<i64: 1, 8, 128>}, {transform_indices = @transform_4, window_bounds = array<i64: 1, 8, 128>}]} {
    %c0_i32 = arith.constant 0 : i32
    %0 = arith.cmpi eq, %arg1, %c0_i32 : i32
    %1 = arith.extui %0 : i1 to i32
    %c0_i32_0 = arith.constant 0 : i32
    %2 = arith.cmpi ne, %1, %c0_i32_0 : i32
    scf.if %2 {
      %cst_26 = arith.constant 0.000000e+00 : f32
      %40 = vector.broadcast %cst_26 : f32 to vector<8x128xf32>
      %c0_27 = arith.constant 0 : index
      %c0_28 = arith.constant 0 : index
      %c0_29 = arith.constant 0 : index
      %41 = vector.load %arg4[%c0_27, %c0_28, %c0_29] : memref<1x8x128xf32, #tpu.memory_space<vmem>>, vector<1x8x128xf32>
      %42 = vector.shape_cast %41 : vector<1x8x128xf32> to vector<8x128xf32>
      %43 = vector.shape_cast %40 : vector<8x128xf32> to vector<1x8x128xf32>
      tpu.vector_store %arg4[%c0_27, %c0_28, %c0_29], %43 {strides = array<i32>} : memref<1x8x128xf32, #tpu.memory_space<vmem>>, vector<1x8x128xf32>,
      %cst_30 = arith.constant 0.000000e+00 : f32
      %44 = vector.broadcast %cst_30 : f32 to vector<8x128xf32>
      %c0_31 = arith.constant 0 : index
      %c0_32 = arith.constant 0 : index
      %c0_33 = arith.constant 0 : index
      %45 = vector.load %arg5[%c0_31, %c0_32, %c0_33] : memref<1x8x128xf32, #tpu.memory_space<vmem>>, vector<1x8x128xf32>
      %46 = vector.shape_cast %45 : vector<1x8x128xf32> to vector<8x128xf32>
      %47 = vector.shape_cast %44 : vector<8x128xf32> to vector<1x8x128xf32>
      tpu.vector_store %arg5[%c0_31, %c0_32, %c0_33], %47 {strides = array<i32>} : memref<1x8x128xf32, #tpu.memory_space<vmem>>, vector<1x8x128xf32>,
      %cst_34 = arith.constant 0.000000e+00 : f32
      %48 = vector.broadcast %cst_34 : f32 to vector<8x128xf32>
      %c0_35 = arith.constant 0 : index
      %c0_36 = arith.constant 0 : index
      %c0_37 = arith.constant 0 : index
      %49 = vector.load %arg6[%c0_35, %c0_36, %c0_37] : memref<1x8x128xf32, #tpu.memory_space<vmem>>, vector<1x8x128xf32>
      %50 = vector.shape_cast %49 : vector<1x8x128xf32> to vector<8x128xf32>
      %51 = vector.shape_cast %48 : vector<8x128xf32> to vector<1x8x128xf32>
      tpu.vector_store %arg6[%c0_35, %c0_36, %c0_37], %51 {strides = array<i32>} : memref<1x8x128xf32, #tpu.memory_space<vmem>>, vector<1x8x128xf32>,
    } else {
    }
    %c0 = arith.constant 0 : index
    %c0_1 = arith.constant 0 : index
    %3 = vector.load %arg2[%c0, %c0_1] : memref<16x128xf32, #tpu.memory_space<vmem>>, vector<16x128xf32>
    %cst = arith.constant 0.000000e+00 : f32
    %4 = vector.broadcast %cst : f32 to vector<16x128xf32>
    %5 = arith.cmpf ogt, %3, %4 : vector<16x128xf32>
    %c0_2 = arith.constant 0 : index
    %c0_3 = arith.constant 0 : index
    %6 = vector.load %arg3[%c0_2, %c0_3] : memref<16x128xf32, #tpu.memory_space<vmem>>, vector<16x128xf32>
    %cst_4 = arith.constant 5.000000e-01 : f32
    %7 = vector.broadcast %cst_4 : f32 to vector<16x128xf32>
    %8 = arith.cmpf ogt, %6, %7 : vector<16x128xf32>
    %9 = arith.extui %5 : vector<16x128xi1> to vector<16x128xi32>
    %10 = arith.sitofp %9 : vector<16x128xi32> to vector<16x128xf32>
    %11 = arith.extui %8 : vector<16x128xi1> to vector<16x128xi32>
    %12 = arith.sitofp %11 : vector<16x128xi32> to vector<16x128xf32>
    %13 = arith.andi %5, %8 : vector<16x128xi1>
    %14 = arith.extui %13 : vector<16x128xi1> to vector<16x128xi32>
    %15 = arith.sitofp %14 : vector<16x128xi32> to vector<16x128xf32>
    %c0_5 = arith.constant 0 : index
    %c0_6 = arith.constant 0 : index
    %c0_7 = arith.constant 0 : index
    %16 = vector.load %arg4[%c0_5, %c0_6, %c0_7] : memref<1x8x128xf32, #tpu.memory_space<vmem>>, vector<1x8x128xf32>
    %17 = vector.shape_cast %16 : vector<1x8x128xf32> to vector<8x128xf32>
    %18 = vector.shape_cast %15 : vector<16x128xf32> to vector<2x8x128xf32>
    %cst_8 = arith.constant dense<0.000000e+00> : vector<8x128xf32>
    %19 = vector.multi_reduction <add>, %18, %cst_8 [0] : vector<2x8x128xf32> to vector<8x128xf32>
    %20 = arith.addf %17, %19 : vector<8x128xf32>
    %c0_9 = arith.constant 0 : index
    %c0_10 = arith.constant 0 : index
    %c0_11 = arith.constant 0 : index
    %21 = vector.load %arg4[%c0_9, %c0_10, %c0_11] : memref<1x8x128xf32, #tpu.memory_space<vmem>>, vector<1x8x128xf32>
    %22 = vector.shape_cast %21 : vector<1x8x128xf32> to vector<8x128xf32>
    %23 = vector.shape_cast %20 : vector<8x128xf32> to vector<1x8x128xf32>
    tpu.vector_store %arg4[%c0_9, %c0_10, %c0_11], %23 {strides = array<i32>} : memref<1x8x128xf32, #tpu.memory_space<vmem>>, vector<1x8x128xf32>,
    %c0_12 = arith.constant 0 : index
    %c0_13 = arith.constant 0 : index
    %c0_14 = arith.constant 0 : index
    %24 = vector.load %arg5[%c0_12, %c0_13, %c0_14] : memref<1x8x128xf32, #tpu.memory_space<vmem>>, vector<1x8x128xf32>
    %25 = vector.shape_cast %24 : vector<1x8x128xf32> to vector<8x128xf32>
    %26 = vector.shape_cast %10 : vector<16x128xf32> to vector<2x8x128xf32>
    %cst_15 = arith.constant dense<0.000000e+00> : vector<8x128xf32>
    %27 = vector.multi_reduction <add>, %26, %cst_15 [0] : vector<2x8x128xf32> to vector<8x128xf32>
    %28 = arith.addf %25, %27 : vector<8x128xf32>
    %c0_16 = arith.constant 0 : index
    %c0_17 = arith.constant 0 : index
    %c0_18 = arith.constant 0 : index
    %29 = vector.load %arg5[%c0_16, %c0_17, %c0_18] : memref<1x8x128xf32, #tpu.memory_space<vmem>>, vector<1x8x128xf32>
    %30 = vector.shape_cast %29 : vector<1x8x128xf32> to vector<8x128xf32>
    %31 = vector.shape_cast %28 : vector<8x128xf32> to vector<1x8x128xf32>
    tpu.vector_store %arg5[%c0_16, %c0_17, %c0_18], %31 {strides = array<i32>} : memref<1x8x128xf32, #tpu.memory_space<vmem>>, vector<1x8x128xf32>,
    %c0_19 = arith.constant 0 : index
    %c0_20 = arith.constant 0 : index
    %c0_21 = arith.constant 0 : index
    %32 = vector.load %arg6[%c0_19, %c0_20, %c0_21] : memref<1x8x128xf32, #tpu.memory_space<vmem>>, vector<1x8x128xf32>
    %33 = vector.shape_cast %32 : vector<1x8x128xf32> to vector<8x128xf32>
    %34 = vector.shape_cast %12 : vector<16x128xf32> to vector<2x8x128xf32>
    %cst_22 = arith.constant dense<0.000000e+00> : vector<8x128xf32>
    %35 = vector.multi_reduction <add>, %34, %cst_22 [0] : vector<2x8x128xf32> to vector<8x128xf32>
    %36 = arith.addf %33, %35 : vector<8x128xf32>
    %c0_23 = arith.constant 0 : index
    %c0_24 = arith.constant 0 : index
    %c0_25 = arith.constant 0 : index
    %37 = vector.load %arg6[%c0_23, %c0_24, %c0_25] : memref<1x8x128xf32, #tpu.memory_space<vmem>>, vector<1x8x128xf32>
    %38 = vector.shape_cast %37 : vector<1x8x128xf32> to vector<8x128xf32>
    %39 = vector.shape_cast %36 : vector<8x128xf32> to vector<1x8x128xf32>
    tpu.vector_store %arg6[%c0_23, %c0_24, %c0_25], %39 {strides = array<i32>} : memref<1x8x128xf32, #tpu.memory_space<vmem>>, vector<1x8x128xf32>,
    return
  }
  func.func @transform_0(%arg0: i32, %arg1: i32) -> (i32, i32) {
    %c1_i32 = arith.constant 1 : i32
    %0 = arith.muli %arg0, %c1_i32 : i32
    %1 = arith.addi %0, %arg1 : i32
    %c0_i32 = arith.constant 0 : i32
    %2 = arith.minsi %1, %c0_i32 : i32
    %c0_i32_0 = arith.constant 0 : i32
    %c0_i32_1 = arith.constant 0 : i32
    return %2, %c0_i32_0 : i32, i32
  }
  func.func @transform_1(%arg0: i32, %arg1: i32) -> (i32, i32) {
    %c1_i32 = arith.constant 1 : i32
    %0 = arith.muli %arg0, %c1_i32 : i32
    %1 = arith.addi %0, %arg1 : i32
    %c0_i32 = arith.constant 0 : i32
    %2 = arith.minsi %1, %c0_i32 : i32
    %c0_i32_0 = arith.constant 0 : i32
    %c0_i32_1 = arith.constant 0 : i32
    return %2, %c0_i32_0 : i32, i32
  }
  func.func @transform_2(%arg0: i32, %arg1: i32) -> (i32, i32, i32) {
    %c0_i32 = arith.constant 0 : i32
    %c0_i32_0 = arith.constant 0 : i32
    %c0_i32_1 = arith.constant 0 : i32
    return %arg0, %c0_i32, %c0_i32_0 : i32, i32, i32
  }
  func.func @transform_3(%arg0: i32, %arg1: i32) -> (i32, i32, i32) {
    %c0_i32 = arith.constant 0 : i32
    %c0_i32_0 = arith.constant 0 : i32
    %c0_i32_1 = arith.constant 0 : i32
    return %arg0, %c0_i32, %c0_i32_0 : i32, i32, i32
  }
  func.func @transform_4(%arg0: i32, %arg1: i32) -> (i32, i32, i32) {
    %c0_i32 = arith.constant 0 : i32
    %c0_i32_0 = arith.constant 0 : i32
    %c0_i32_1 = arith.constant 0 : i32
    return %arg0, %c0_i32, %c0_i32_0 : i32, i32, i32
  }
}

</mosaic_0001>

<bundles_post_ra>
// kernel: _forward_device.1
= control target key start
LH: loop header
LB: loop body
LE: loop exit
PB: predicated region body
PF: predicated region fallthrough
CT: control target
= control target key end

     0   :  { %v150_v4 = vmov 0.0   ;;  %s197_s0 = inlined_call_operand.vmem [shape: f32[16,128], index: 0, kind: input, shape index: {}]   ;;  %s198_s1 = inlined_call_operand.vmem [shape: f32[16,128], index: 1, kind: input, shape index: {}]   ;;  %s199_s3 = inlined_call_operand.vmem [shape: f32[1,8,128], index: 3, kind: output, shape index: {1}]   ;;  %s200_s4 = inlined_call_operand.vmem [shape: f32[1,8,128], index: 4, kind: output, shape index: {2}]   ;;  %s201_s2 = inlined_call_operand.vmem [shape: f32[1,8,128], index: 2, kind: output, shape index: {0}]  }
   0x1   :  { %v85_v0 = vld [vmem:[%s197_s0] sm:$0xff]  ;;  %v86_v1 = vld [vmem:[%s197_s0 + $0x8] sm:$0xff] }
   0x2   :  { %v89_v2 = vld [vmem:[%s198_s1] sm:$0xff]  ;;  %vm87_vm0 = vcmp.gt.f32.partialorder %v85_v0, 0.0  ;;  %vm88_vm1 = vcmp.gt.f32.partialorder %v86_v1, 0.0  ;;  %v90_v3 = vld [vmem:[%s198_s1 + $0x8] sm:$0xff] }
   0x3   :  { %vm91_vm2 = vcmp.gt.f32.partialorder %v89_v2, 0.5  ;;  %vm92_vm3 = vcmp.gt.f32.partialorder %v90_v3, 0.5  ;;  %v143_v5 = vsel %vm87_vm0, 1.0, %v150_v4  ;;  %v144_v6 = vsel %vm88_vm1, 1.0, %v150_v4 }
   0x4   :  { %vm101_vm4 = vmand %vm87_vm0, %vm91_vm2  ;;  %v145_v7 = vsel %vm91_vm2, 1.0, %v150_v4  ;;  %v112_v9 = vadd.f32 %v144_v6, %v143_v5  ;;  %v146_v10 = vsel %vm92_vm3, 1.0, %v150_v4 }
   0x5   :  { %vm102_vm5 = vmand %vm88_vm1, %vm92_vm3  ;;  %v147_v8 = vsel %vm101_vm4, 1.0, %v150_v4  ;;  %v116_v12 = vadd.f32 %v146_v10, %v145_v7 }
   0x6   :  { %v148_v11 = vsel %vm102_vm5, 1.0, %v150_v4  ;;  %114 = vst [vmem:[%s199_s3] sm:$0xff] %v112_v9 }
   0x7   :  { %v108_v13 = vadd.f32 %v148_v11, %v147_v8  ;;  %118 = vst [vmem:[%s200_s4] sm:$0xff] %v116_v12 }
   0x9   :  { %110 = vst [vmem:[%s201_s2] sm:$0xff] %v108_v13 }

</bundles_post_ra>
